<compile_context>
chip_gen: v7x
topology: tpu7x:2x2x1
jax: 0.10.0
libtpu: 0.0.40
codegen_flags: <defaults>
</compile_context>

<pallas_src>
import jax
import jax.numpy as jnp
from jax.experimental import pallas as pl
from jax.experimental.pallas import tpu as pltpu


def _packed_linear_kernel(x_ref, w_ref, o_ref):
    # x_ref: (tm, k*F)   w_ref: (k*F, k*N)   o_ref: (tm, k*N)
    o_ref[...] = jnp.dot(
        x_ref[...], w_ref[...], preferred_element_type=jnp.float32
    ).astype(o_ref.dtype)


def _round_up(a, m):
    return ((a + m - 1) // m) * m


def _choose_pack_factor(n_out, n_tokens):
    """Pick k so that k*n_out is 128-lane dense.

    Keep k <= 8: the kron(I_k, W^T) trick multiplies MXU work by k, which is
    harmless while the kernel is HBM-bound, but large k (e.g. 128 to make k*F
    lane-dense too) would make the kernel MXU-bound on v5e.  Among the valid k,
    prefer one that divides the token count so no input pad / output slice copy
    is needed.
    """
    if n_out % 128 == 0:
        return 1  # already lane-dense
    candidates = [k for k in (8, 4, 2) if (k * n_out) % 128 == 0]
    if not candidates:
        return 1
    for k in candidates:          # largest k that avoids padding entirely
        if n_tokens % k == 0:
            return k
    return candidates[0]          # fall back: pad at most k-1 tokens


def voxel_feat_encoder_forward(x, weight, *, tm_rows=4096, out_dtype=None):
    """x: (B, T, F); weight: (output_dims, input_dims) as in nn.Linear(bias=False)."""
    B, T, F = x.shape
    N, Fin = weight.shape
    assert Fin == F, "weight input dim must match feature dim"
    M = B * T
    out_dtype = x.dtype if out_dtype is None else jnp.dtype(out_dtype)

    # --- token packing setup -------------------------------------------------
    k = _choose_pack_factor(N, M)
    kF, kN = k * F, k * N

    m_pad = _round_up(M, k)
    rows = m_pad // k

    x2d = x.reshape(M, F)
    if m_pad != M:
        # TODO(synk): when M % k != 0 this pad (and the matching output slice)
        # materializes one extra HBM pass; could be removed by scalar-prefetching
        # the valid token count and masking the final tile's stores in-kernel.
        x2d = jnp.pad(x2d, ((0, m_pad - M), (0, 0)))  # zero rows -> zero outputs
    x_packed = x2d.reshape(rows, kF)  # free reshape of contiguous row-major data

    # Block-diagonal weight: kron(I_k, W^T) has W^T (F, N) blocks on the diagonal.
    if k > 1:
        w_bd = jnp.kron(jnp.eye(k, dtype=weight.dtype), weight.T)  # (k*F, k*N)
    else:
        w_bd = weight.T

    # --- row-tile choice ------------------------------------------------------
    # Big tiles to amortize the ~0.35 us/step pipeline overhead, but cap so the
    # grid keeps ~4 steps (>=2) on mid-size inputs -> both TCs busy on v7x.
    if rows < 8:
        tm = rows                                     # single full-array block
    else:
        tm_pref = max(_round_up(pl.cdiv(rows, 4), 8), 1024)
        tm = min(_round_up(tm_rows, 8), tm_pref, (rows // 8) * 8)
    grid_m = pl.cdiv(rows, tm)                        # ragged last tile is masked

    # --- accurate scheduler hint ---------------------------------------------
    itm_in = jnp.dtype(x.dtype).itemsize
    itm_w = jnp.dtype(weight.dtype).itemsize
    itm_out = jnp.dtype(out_dtype).itemsize
    cost = pl.CostEstimate(
        flops=2 * rows * kF * kN,  # true block-diagonal MXU work (k x logical flops)
        transcendentals=0,
        bytes_accessed=rows * kF * itm_in + kF * kN * itm_w + rows * kN * itm_out,
    )

    out_packed = pl.pallas_call(
        _packed_linear_kernel,
        out_shape=jax.ShapeDtypeStruct((rows, kN), out_dtype),
        grid_spec=pltpu.PrefetchScalarGridSpec(
            num_scalar_prefetch=0,
            grid=(grid_m,),
            in_specs=[
                pl.BlockSpec((tm, kF), lambda i: (i, 0)),   # tile of packed tokens
                pl.BlockSpec((kF, kN), lambda i: (0, 0)),   # full weight, VMEM-resident
            ],
            out_specs=pl.BlockSpec((tm, kN), lambda i: (i, 0)),  # lane-dense output
        ),
        compiler_params=pltpu.CompilerParams(
            dimension_semantics=("parallel",),      # shards grid across TCs on v7x
            vmem_limit_bytes=32 * 1024 * 1024,      # ~11 MB working set at tm=4096
        ),
        cost_estimate=cost,
    )(x_packed, w_bd)

    # Unpack: (rows, k*N) -> (rows*k, N) -> drop padded tokens (only if padded).
    out2d = out_packed.reshape(rows * k, N)
    if m_pad != M:
        out2d = out2d[:M]
    return out2d.reshape(B, T, N)


if __name__ == "__main__":
    # Small shapes consistent with the module: 9-channel voxel features -> 32 dims.
    B, T = 2, 8
    input_dims = 9
    output_dims = 32
    encoder_hidden_dims = 16  # stored by the module but unused in forward

    key = jax.random.PRNGKey(0)
    kx, kw, kx2 = jax.random.split(key, 3)

    x = jax.random.normal(kx, (B, T, input_dims), dtype=jnp.float32)
    # Deterministic nn.Linear-style init: U(-1/sqrt(fan_in), 1/sqrt(fan_in)).
    bound = 1.0 / (input_dims ** 0.5)
    weight = jax.random.uniform(
        kw, (output_dims, input_dims), dtype=jnp.float32, minval=-bound, maxval=bound
    )

    out = voxel_feat_encoder_forward(x, weight)
    out = jax.block_until_ready(out)

    ref = (x.reshape(B * T, input_dims) @ weight.T).reshape(B, T, output_dims)
    assert out.shape == (B, T, output_dims)
    assert jnp.allclose(out, ref, atol=1e-5, rtol=1e-5)

    # Second check: token count not a multiple of the pack factor (exercises the
    # minimal-pad path and the ragged/partial last grid tile).
    B2, T2 = 3, 50  # M = 150, not divisible by 8 or 4
    x2 = jax.random.normal(kx2, (B2, T2, input_dims), dtype=jnp.float32)
    out2 = jax.block_until_ready(voxel_feat_encoder_forward(x2, weight))
    ref2 = (x2.reshape(B2 * T2, input_dims) @ weight.T).reshape(B2, T2, output_dims)
    assert out2.shape == (B2, T2, output_dims)
    assert jnp.allclose(out2, ref2, atol=1e-5, rtol=1e-5)

    print("KERNEL_OK")
</pallas_src>

<mosaic_0001>
module attributes {stable_mosaic.version = 11 : i64} {
  func.func @_packed_linear_kernel(%arg0: i32, %arg1: memref<2x72xf32, #tpu.memory_space<vmem>>, %arg2: memref<72x256xf32, #tpu.memory_space<vmem>>, %arg3: memref<2x256xf32, #tpu.memory_space<vmem>>) attributes {dimension_semantics = [#tpu.dimension_semantics<parallel>], iteration_bounds = array<i64: 1>, scalar_prefetch = 0 : i64, scratch_operands = 0 : i64, tpu.core_type = #tpu.core_type<tc>, window_params = [{transform_indices = @transform_0, window_bounds = array<i64: 2, 72>}, {pipeline_mode = #tpu.pipeline_mode<synchronous>, transform_indices = @transform_1, window_bounds = array<i64: 72, 256>}, {transform_indices = @transform_2, window_bounds = array<i64: 2, 256>}]} {
    %c0 = arith.constant 0 : index
    %c0_0 = arith.constant 0 : index
    %0 = vector.load %arg1[%c0, %c0_0] : memref<2x72xf32, #tpu.memory_space<vmem>>, vector<2x72xf32>
    %c0_1 = arith.constant 0 : index
    %c0_2 = arith.constant 0 : index
    %1 = vector.load %arg2[%c0_1, %c0_2] : memref<72x256xf32, #tpu.memory_space<vmem>>, vector<72x256xf32>
    %cst = arith.constant dense<0.000000e+00> : vector<2x256xf32>
    %2 = tpu.matmul %0, %1, %cst {dimension_numbers = #tpu.dot_dimension_numbers<[1], [0], [0], [1], [0, 0, 1, 1], [], []>} : vector<2x72xf32>, vector<72x256xf32>, vector<2x256xf32> -> vector<2x256xf32>
    %c0_3 = arith.constant 0 : index
    %c0_4 = arith.constant 0 : index
    %3 = vector.load %arg3[%c0_3, %c0_4] : memref<2x256xf32, #tpu.memory_space<vmem>>, vector<2x256xf32>
    tpu.vector_store %arg3[%c0_3, %c0_4], %2 {strides = array<i32>} : memref<2x256xf32, #tpu.memory_space<vmem>>, vector<2x256xf32>,
    return
  }
  func.func @transform_0(%arg0: i32) -> (i32, i32) {
    %c0_i32 = arith.constant 0 : i32
    %c0_i32_0 = arith.constant 0 : i32
    return %arg0, %c0_i32 : i32, i32
  }
  func.func @transform_1(%arg0: i32) -> (i32, i32) {
    %c0_i32 = arith.constant 0 : i32
    %c0_i32_0 = arith.constant 0 : i32
    %c0_i32_1 = arith.constant 0 : i32
    return %c0_i32, %c0_i32_0 : i32, i32
  }
  func.func @transform_2(%arg0: i32) -> (i32, i32) {
    %c0_i32 = arith.constant 0 : i32
    %c0_i32_0 = arith.constant 0 : i32
    return %arg0, %c0_i32 : i32, i32
  }
}

</mosaic_0001>

<bundles_post_ra>
// kernel: tpu_custom_call.1
= control target key start
LH: loop header
LB: loop body
LE: loop exit
PB: predicated region body
PF: predicated region fallthrough
CT: control target
= control target key end

     0   :  { %7 = vsyncpa [#allocation3], 0  ;;  %s320_s0 = inlined_call_operand.hbm [shape: f32[2,72], index: 0, kind: input, shape index: {}]   ;;  %s321_s1 = inlined_call_operand.hbm [shape: f32[72,256], index: 1, kind: input, shape index: {}]   ;;  %s322_s2 = inlined_call_operand.hbm [shape: f32[2,256], index: 2, kind: output, shape index: {}]  }
   0x1   :  { %8 = vsyncpa [#allocation6], 0 }
   0x2   :  { %9 = vsyncpa [#allocation4], 0  ;;  %s256_s9 = smov [#allocation2]   ;;  %s257_s11 = smov [#allocation5]  }
   0x3   :  { %s16_s10 = sshll.u32 %s256_s9, 4  ;;  %s25_s12 = sshll.u32 %s257_s11, 4  ;;  %s17_s10 = int_to_ptr.vmem [resolvable:$true] %s16_s10  ;;  %s277_s12 = int_to_ptr.vmem [resolvable:$true] %s25_s12 }
   0x4   :  { %s184_s15 = scalar_lea.hbm %s320_s0, 32 }
   0x5   :  { %p185_p0 = scmp.ne.s32.totalorder %s320_s0, %s184_s15  ;;  %p188_p1 = scmp.lt.u32.totalorder %s184_s15, %s320_s0 }
   0x7   :  { %p190_p2 = pnand %p188_p1, %p185_p0 }
   0x9   :  { %193 = shalt.err (!%p190_p2)
}
   0xa   :  { %s194_s20 = scalar_lea.vmem %s17_s10, 32  ;;  %p199_p4 = scmp.lt.s32.totalorder %s17_s10, %s17_s10 }
   0xb   :  { %p195_p3 = scmp.ne.s32.totalorder %s17_s10, %s194_s20  ;;  %p200_p5 = scmp.lt.s32.totalorder %s194_s20, %s194_s20 }
   0xd   :  { %p201_p6 = por %p200_p5, %p199_p4 }
   0xf   :  { %p202_p7 = pnand %p201_p6, %p195_p3 }
  0x11   :  { %205 = shalt.err (!%p202_p7)
}
  0x12   :  { %19 = dma.hbm_to_vmem [thread:$0]  %s320_s0, 32, %s17_s10, [#allocation3]  }
  0x13   :  { %s206_s25 = scalar_lea.hbm %s321_s1, 2304 }
  0x14   :  { %p207_p8 = scmp.ne.s32.totalorder %s321_s1, %s206_s25  ;;  %p210_p9 = scmp.lt.u32.totalorder %s206_s25, %s321_s1 }
  0x16   :  { %p212_p10 = pnand %p210_p9, %p207_p8 }
  0x18   :  { %215 = shalt.err (!%p212_p10)
}
  0x19   :  { %s216_s30 = scalar_lea.vmem %s277_s12, 2304  ;;  %p221_p12 = scmp.lt.s32.totalorder %s277_s12, %s277_s12 }
  0x1a   :  { %p217_p11 = scmp.ne.s32.totalorder %s277_s12, %s216_s30  ;;  %p222_p13 = scmp.lt.s32.totalorder %s216_s30, %s216_s30 }
  0x1c   :  { %p223_p0 = por %p222_p13, %p221_p12 }
  0x1e   :  { %p224_p1 = pnand %p223_p0, %p217_p11 }
  0x20   :  { %227 = shalt.err (!%p224_p1)
}
  0x21   :  { %s258_s0 = smov 256   ;;  %s259_s3 = smov 16  }
  0x22   :  { %31 = dma.hbm_to_vmem [thread:$0]  %s321_s1, 2304, %s277_s12, [#allocation6], %s258_s0, %s258_s0, %s259_s3  }
  0x23   :  { %250 = dma.done.wait [#allocation3], 32  }
  0x24   :  { %251 = vsyncadd [#allocation3], 4294967264 }
  0x25   :  { %252 = dma.done.wait [#allocation6], 2304  }
  0x26   :  { %253 = vsyncadd [#allocation6], 4294964992  ;;  %v260_v0 = vmov 0.0   ;;  %v40_v1 = vld [vmem:[#allocation5 + $0x8] sm:$0xff]  ;;  %v42_v2 = vld [vmem:[#allocation5 + $0x18] sm:$0xff]  ;;  %vm57_vm0 = vcmask 588800  }
  0x27   :  { %125 = vmatprep.mubr.f32.mxu0 %v260_v0  ;;  %v39_v3 = vld [vmem:[#allocation5] sm:$0xff]  ;;  %v162_v4 = vpack.c.bf16 %v42_v2, %v40_v1  ;;  %v41_v5 = vld [vmem:[#allocation5 + $0x10] sm:$0xff]  ;;  %v44_v6 = vld [vmem:[#allocation5 + $0x28] sm:$0xff]  ;;  %s261_s1 = smov [#allocation7]  }
  0x28   :  { %v46_v7 = vld [vmem:[#allocation5 + $0x38] sm:$0xff]  ;;  %v164_v8 = vpack.c.bf16 %v41_v5, %v39_v3  ;;  %v43_v10 = vld [vmem:[#allocation5 + $0x20] sm:$0xff]  ;;  %v45_v11 = vld [vmem:[#allocation5 + $0x30] sm:$0xff]  ;;  %s150_s6 = sshll.u32 %s261_s1, 4  ;;  %s151_s6 = int_to_ptr.vmem [resolvable:$true] %s150_s6 }
  0x29   :  { %v166_v9 = vpack.c.bf16 %v46_v7, %v44_v6  ;;  %v48_v12 = vld [vmem:[#allocation5 + $0x48] sm:$0xff]  ;;  %163 = vmatprep.subr.bf16.mxu0 %v162_v4  ;;  %v50_v13 = vld [vmem:[#allocation5 + $0x58] sm:$0xff]  ;;  %v168_v14 = vpack.c.bf16 %v45_v11, %v43_v10  ;;  %v47_v16 = vld [vmem:[#allocation5 + $0x40] sm:$0xff]  ;;  %s228_s7 = scalar_lea.vmem %s151_s6, 64  ;;  %p233_p3 = scmp.lt.s32.totalorder %s151_s6, %s151_s6 }
  0x2a   :  { %165 = vmatpush1.bf16.msra.mxu0 %v164_v8  ;;  %v170_v15 = vpack.c.bf16 %v50_v13, %v48_v12  ;;  %v49_v17 = vld [vmem:[#allocation5 + $0x50] sm:$0xff]  ;;  %v52_v18 = vld [vmem:[#allocation5 + $0x68] sm:$0xff]  ;;  %v54_v19 = vld [vmem:[#allocation5 + $0x78] sm:$0xff]  ;;  %p229_p2 = scmp.ne.s32.totalorder %s151_s6, %s228_s7  ;;  %p234_p4 = scmp.lt.s32.totalorder %s228_s7, %s228_s7 }
  0x2b   :  { %167 = vmatprep.subr.bf16.mxu0 %v166_v9  ;;  %v172_v20 = vpack.c.bf16 %v49_v17, %v47_v16  ;;  %v174_v21 = vpack.c.bf16 %v54_v19, %v52_v18  ;;  %v51_v22 = vld [vmem:[#allocation5 + $0x60] sm:$0xff]  ;;  %v53_v23 = vld [vmem:[#allocation5 + $0x70] sm:$0xff]  ;;  %v56_v25 = vld [vmem:[#allocation5 + $0x88] sm:$0xff] }
  0x2c   :  { %v176_v24 = vpack.c.bf16 %v53_v23, %v51_v22  ;;  %v55_v26 = vld [vmem:[#allocation5 + $0x80] sm:$0xff]  ;;  %v38_v27 = vld [vmem:[#allocation2] sm:$0x3]  ;;  %p235_p5 = por %p234_p4, %p233_p3 }
  0x2e   :  { %169 = vmatpush1.bf16.msra.mxu0 %v168_v14  ;;  %p236_p6 = pnand %p235_p5, %p229_p2 }
  0x2f   :  { %171 = vmatprep.subr.bf16.mxu0 %v170_v15 }
  0x32   :  { %173 = vmatpush1.bf16.msra.mxu0 %v172_v20 }
  0x33   :  { %175 = vmatprep.subr.bf16.mxu0 %v174_v21 }
  0x36   :  { %177 = vmatpush1.bf16.msra.mxu0 %v176_v24 }
  0x37   :  { %77 = vmatprep.subr.mxu0 %v56_v25 }
  0x3a   :  { %78 = vmatpush1.msra.mxu0 %v55_v26 }
  0x3b   :  { %160 = vmatmul.mubr.msk.f32.vlgmr.msra.gmra.mrb[0].mxu0 %vm57_vm0, %v38_v27 }
 0x10e   :  { %v127_v28 = vpop.f32.mrb[0].mxu0 }
 0x10f   :  { %v129_v29 = vpop.f32.mrb[1].mxu0 }
 0x110   :  { %v134_v30 = vcombine.low %v127_v28, %v129_v29 }
 0x112   :  { %161 = vst.sshfl [vmem:[#allocation7] sm:$0x33 pattern:$0x76325410] %v134_v30 }
 0x113   :  { %239 = shalt.err (!%p236_p6)
}
 0x114   :  { %s240_s10 = scalar_lea.hbm %s322_s2, 64 }
 0x115   :  { %p241_p7 = scmp.ne.s32.totalorder %s322_s2, %s240_s10  ;;  %p244_p8 = scmp.lt.u32.totalorder %s240_s10, %s322_s2 }
 0x117   :  { %p246_p9 = pnand %p244_p8, %p241_p7 }
 0x119   :  { %249 = shalt.err (!%p246_p9)
}
 0x11a   :  { %153 = dma.vmem_to_hbm [thread:$0]  %s151_s6, 64, %s322_s2, [#allocation4]  }
 0x11b   :  { %254 = dma.done.wait [#allocation4], 64  }
 0x11c   :  { %255 = vsyncadd [#allocation4], 4294967232 }
 0x11d   :  { %157 = vsyncpa [#allocation3], 1 }
 0x11e   :  { %158 = vsyncpa [#allocation6], 1 }
 0x11f   :  { %159 = vsyncpa [#allocation4], 1 }

</bundles_post_ra>
